<compile_context>
chip_gen: v5e
topology: v5e:2x2
jax: 0.10.0
libtpu: 0.0.40
codegen_flags: <defaults>
</compile_context>

<pallas_src>
import jax
import jax.numpy as jnp
from jax.experimental import pallas as pl
from jax.experimental.pallas import tpu as pltpu


def _round_up(n: int, m: int) -> int:
    return ((n + m - 1) // m) * m


def linear_kernel(x_ref, w_ref, b_ref, o_ref):
    # x_ref: (TB, IN) row-major input tile (one contiguous HBM slab per step)
    # w_ref: (1, IN)  weight row (PyTorch layout), resident in VMEM
    # b_ref: (1,)     scalar bias in SMEM
    # o_ref: (TB, 1)  output tile
    prod = x_ref[...] * w_ref[...]                                   # VPU (sublane-broadcast mul)
    o_ref[...] = jnp.sum(prod, axis=-1, keepdims=True) + b_ref[0]    # XLU lane reduce + SMEM scalar bias


def simple_nn_forward(x, weight, bias, *, batch_tile=8192,
                      min_kernel_batch=4096, force_kernel=False):
    """y = x @ weight.T + bias  (PyTorch nn.Linear(10, 1) forward).

    x: (B, 10) f32, weight: (1, 10) f32 (PyTorch (out, in) layout), bias: (1,) f32.
    Returns (B, 1) f32.
    """
    B, IN = x.shape
    OUT = weight.shape[0]

    # Small-batch fast path: the four-dispatch kernel path is pure overhead for
    # tiny batches of this mem-bound layer.
    if not force_kernel and B < min_kernel_batch:
        return x @ weight.T + bias.reshape(1, OUT)

    # Batch tile: multiple of 8 sublanes, clamped so tiny batches do not
    # allocate oversized VMEM blocks.  Double-buffered in+out footprint is
    # ~TB*2 KiB after lane padding -> ~16 MiB at the default TB=8192.
    tb = min(_round_up(batch_tile, 8), _round_up(B, 8))
    grid = (pl.cdiv(B, tb),)   # partial final block handled by Pallas

    cost = pl.CostEstimate(
        flops=2 * B * IN * OUT,
        transcendentals=0,
        bytes_accessed=(B * IN + B * OUT + IN * OUT + OUT) * 4,
    )

    return pl.pallas_call(
        linear_kernel,
        out_shape=jax.ShapeDtypeStruct((B, OUT), jnp.float32),
        grid=grid,
        in_specs=[
            # x tile: (TB, 10); block spans the full 10-wide last dim, so each
            # grid step is a single contiguous DMA of TB rows.
            pl.BlockSpec((tb, IN), lambda i: (i, 0)),
            # weight row: same block index every step -> stays resident in VMEM.
            pl.BlockSpec((OUT, IN), lambda i: (0, 0)),
            # bias: full (1,) array in SMEM, read as a scalar.
            pl.BlockSpec(memory_space=pltpu.MemorySpace.SMEM),
        ],
        out_specs=pl.BlockSpec((tb, OUT), lambda i: (i, 0)),
        compiler_params=pltpu.CompilerParams(
            dimension_semantics=("parallel",),   # shard batch tiles across TCs (v7x)
            vmem_limit_bytes=32 * 1024 * 1024,   # explicit; portable to v7x 64 MiB VMEM
        ),
        cost_estimate=cost,
    )(x, weight, bias)


if __name__ == "__main__":
    key = jax.random.PRNGKey(0)
    k_x, k_w, k_b, k_x2 = jax.random.split(key, 4)

    IN, OUT = 10, 1

    # Deterministic parameter init (mimics nn.Linear's uniform(-1/sqrt(in), 1/sqrt(in)))
    bound = 1.0 / (IN ** 0.5)
    weight = jax.random.uniform(k_w, (OUT, IN), jnp.float32, -bound, bound)  # PyTorch (out, in)
    bias = jax.random.uniform(k_b, (OUT,), jnp.float32, -bound, bound)

    # Case 1: tiny batch (B=2) forced through the Pallas kernel
    # (single partial block, exercises the no-pad path).
    x_small = jax.random.normal(k_x, (2, IN), jnp.float32)
    out_small = jax.block_until_ready(
        simple_nn_forward(x_small, weight, bias, force_kernel=True))
    ref_small = x_small @ weight.T + bias
    assert out_small.shape == (2, OUT)
    assert jnp.allclose(out_small, ref_small, atol=1e-5, rtol=1e-5)

    # Case 2: multi-tile grid with a partial final block (B=1000, TB=256).
    x_big = jax.random.normal(k_x2, (1000, IN), jnp.float32)
    out_big = jax.block_until_ready(
        simple_nn_forward(x_big, weight, bias, batch_tile=256, force_kernel=True))
    ref_big = x_big @ weight.T + bias
    assert out_big.shape == (1000, OUT)
    assert jnp.allclose(out_big, ref_big, atol=1e-5, rtol=1e-5)

    # Case 3: small-B fast path (no kernel dispatch), same math.
    out_fast = jax.block_until_ready(simple_nn_forward(x_small, weight, bias))
    assert jnp.allclose(out_fast, ref_small, atol=1e-5, rtol=1e-5)

    print("KERNEL_OK")
</pallas_src>

<mosaic_0001>
module attributes {stable_mosaic.version = 11 : i64} {
  func.func @linear_kernel(%arg0: i32, %arg1: memref<8x10xf32, #tpu.memory_space<vmem>>, %arg2: memref<1x10xf32, #tpu.memory_space<vmem>>, %arg3: memref<1xf32, #tpu.memory_space<smem>>, %arg4: memref<8x1xf32, #tpu.memory_space<vmem>>) attributes {dimension_semantics = [#tpu.dimension_semantics<parallel>], iteration_bounds = array<i64: 1>, scalar_prefetch = 0 : i64, scratch_operands = 0 : i64, tpu.core_type = #tpu.core_type<tc>, window_params = [{transform_indices = @transform_0, window_bounds = array<i64: 8, 10>}, {pipeline_mode = #tpu.pipeline_mode<synchronous>, transform_indices = @transform_1, window_bounds = array<i64: 1, 10>}, {transform_indices = @transform_2, window_bounds = array<i64: 1>}, {transform_indices = @transform_3, window_bounds = array<i64: 8, 1>}]} {
    %c0 = arith.constant 0 : index
    %c0_0 = arith.constant 0 : index
    %0 = vector.load %arg1[%c0, %c0_0] : memref<8x10xf32, #tpu.memory_space<vmem>>, vector<8x10xf32>
    %c0_1 = arith.constant 0 : index
    %c0_2 = arith.constant 0 : index
    %1 = vector.load %arg2[%c0_1, %c0_2] : memref<1x10xf32, #tpu.memory_space<vmem>>, vector<1x10xf32>
    %2 = vector.broadcast %1 : vector<1x10xf32> to vector<8x10xf32>
    %3 = arith.mulf %0, %2 : vector<8x10xf32>
    %cst = arith.constant dense<0.000000e+00> : vector<8xf32>
    %4 = vector.multi_reduction <add>, %3, %cst [1] : vector<8x10xf32> to vector<8xf32>
    %5 = vector.shape_cast %4 : vector<8xf32> to vector<8x1xf32>
    %c0_3 = arith.constant 0 : index
    %6 = memref.load %arg3[%c0_3] : memref<1xf32, #tpu.memory_space<smem>>
    %7 = vector.broadcast %6 : f32 to vector<8x1xf32>
    %8 = arith.addf %5, %7 : vector<8x1xf32>
    %c0_4 = arith.constant 0 : index
    %c0_5 = arith.constant 0 : index
    %9 = vector.load %arg4[%c0_4, %c0_5] : memref<8x1xf32, #tpu.memory_space<vmem>>, vector<8x1xf32>
    tpu.vector_store %arg4[%c0_4, %c0_5], %8 {strides = array<i32>} : memref<8x1xf32, #tpu.memory_space<vmem>>, vector<8x1xf32>,
    return
  }
  func.func @transform_0(%arg0: i32) -> (i32, i32) {
    %c0_i32 = arith.constant 0 : i32
    %c0_i32_0 = arith.constant 0 : i32
    return %arg0, %c0_i32 : i32, i32
  }
  func.func @transform_1(%arg0: i32) -> (i32, i32) {
    %c0_i32 = arith.constant 0 : i32
    %c0_i32_0 = arith.constant 0 : i32
    %c0_i32_1 = arith.constant 0 : i32
    return %c0_i32, %c0_i32_0 : i32, i32
  }
  func.func @transform_2(%arg0: i32) -> i32 {
    %c0_i32 = arith.constant 0 : i32
    %c0_i32_0 = arith.constant 0 : i32
    return %c0_i32 : i32
  }
  func.func @transform_3(%arg0: i32) -> (i32, i32) {
    %c0_i32 = arith.constant 0 : i32
    %c0_i32_0 = arith.constant 0 : i32
    return %arg0, %c0_i32 : i32, i32
  }
}

</mosaic_0001>

<bundles_post_ra>
// kernel: tpu_custom_call.1
= control target key start
LH: loop header
LB: loop body
LE: loop exit
PB: predicated region body
PF: predicated region fallthrough
CT: control target
= control target key end

     0   :  { %9 = vsyncpa [#allocation4], 0  ;;  %s114_s15 = smov [#allocation3]   ;;  %s147_s0 = inlined_call_operand.vmem [shape: f32[2,10], index: 0, kind: input, shape index: {}]   ;;  %s148_s1 = inlined_call_operand.hbm [shape: f32[1,10], index: 1, kind: input, shape index: {}]   ;;  %s149_s2 = inlined_call_operand.<no memory space> [shape: f32[1], index: 2, kind: input, shape index: {}]   ;;  %s150_s3 = inlined_call_operand.vmem [shape: f32[2,1], index: 3, kind: output, shape index: {}]  }
   0x1   :  { %s17_s14 = sshll.u32 %s148_s1, 4  ;;  %s19_s16 = sshll.u32 %s114_s15, 4  ;;  %s18_s14 = int_to_ptr.hbm [resolvable:$true] %s17_s14  ;;  %s20_s16 = int_to_ptr.vmem [resolvable:$true] %s19_s16 }
   0x2   :  { %22 = dma.hbm_to_vmem [thread:$0]  %s18_s14, 16, %s20_s16, [#allocation4]  }
   0x3   :  { %112 = dma.done.wait [#allocation4], 16  }
   0x4   :  { %113 = vsyncadd [#allocation4], 4294967280  ;;  %v29_v0 = vld [vmem:[%s147_s0] sm:$0xff]  ;;  %vm35_vm0 = vcmask 80896   ;;  %v40_v4 = vstv %s149_s2  ;;  %vm42_vm1 = vcmask 7168  }
   0x5   :  { %v87_v1 = vld [vmem:[#allocation3] ss:$0 sm:$0xff] }
   0x6   :  { %v34_v2 = vmul.f32 %v87_v1, %v29_v0 }
   0x8   :  { %v36_v3 = vsel %vm35_vm0, %v34_v2, 0.0 }
   0x9   :  { %37 = vadd.xlane.f32.xlu0 %v36_v3 }
  0x7c   :  { %v38_v5 = vpop.xlane.xlu0 %37 }
  0x7d   :  { %v41_v6 = vadd.f32 %v40_v4, %v38_v5 }
  0x7f   :  { %43 = vst.msk [vmem:[#allocation5] sm:$0xff] %vm42_vm1, %v41_v6 }
  0x86   :  { %v62_v7 = vld [vmem:[#allocation5] sm:$0x3] }
  0x87   :  { %63 = vst [vmem:[%s150_s3] sm:$0x3] %v62_v7 }
  0x88   :  { %81 = vsyncpa [#allocation4], 1 }

</bundles_post_ra>
